<compile_context>
chip_gen: v6e
topology: v6e:2x2x1
jax: 0.10.0
libtpu: 0.0.40
codegen_flags: <defaults>
</compile_context>

<pallas_src>
import jax
import jax.numpy as jnp
from jax.experimental import pallas as pl
from jax.experimental.pallas import tpu as pltpu


_TARGET_BLOCK_BYTES = 4 * 1024 * 1024      # ~4 MiB per block (2-D common path)
_VMEM_LIMIT_BYTES = 32 * 1024 * 1024       # 4x block (double-buffered in+out) + headroom
_RAGGED_BLOCK_ELEMS = 128 * 1024           # conservative block for the 1-D fallback
_COL_CHOICES = (4096, 2048, 1024, 512, 256, 128)


def _round_up(n, m):
    return -(-n // m) * m


def _round_down(n, m):
    return (n // m) * m


def _tanh_der_kernel(x_ref, o_ref):
    x = x_ref[...]
    if not jnp.issubdtype(x.dtype, jnp.floating):
        x = x.astype(jnp.float32)          # int inputs: cast in-kernel (VPU slack)
    t = jnp.tanh(x)
    o_ref[...] = (1.0 - t * t).astype(o_ref.dtype)


def _pick_block_rows(rows, cols, target_elems):
    """Row-block size: multiple of 8, <= ~4 MiB, and >= 2 grid steps when rows > 8."""
    if rows <= 8:
        return rows                                        # single full-dim block
    target = max(8, _round_down(max(target_elems // cols, 8), 8))
    half = _round_up(-(-rows // 2), 8)                      # ceil(rows/2) -> mult of 8
    return min(target, half)


def _ragged_block(total):
    """1-D block size for sizes not divisible by 128 (multiple of 1024, >= 2 steps)."""
    if total <= 1024:
        return total                                       # single full-dim block
    block = min(_RAGGED_BLOCK_ELEMS, _round_down(total, 1024))
    half = _round_up(-(-total // 2), 1024)
    return max(1024, min(block, half))


def tanh_der(x):
    """Compute 1 - tanh(x)**2 with a Pallas TPU kernel. Accepts any shape/dtype."""
    x = jnp.asarray(x)
    orig_shape = x.shape

    if x.dtype == jnp.float64:             # TPU has no f64 (x64 corner case): demote
        x = x.astype(jnp.float32)
    in_dtype = x.dtype
    out_dtype = (jnp.dtype(in_dtype) if jnp.issubdtype(in_dtype, jnp.floating)
                 else jnp.dtype(jnp.float32))

    total = x.size
    if total == 0:
        return jnp.zeros(orig_shape, out_dtype)

    in_itemsize = jnp.dtype(in_dtype).itemsize
    out_itemsize = out_dtype.itemsize
    flat = x.reshape(-1)

    compiler_params = pltpu.CompilerParams(
        dimension_semantics=("parallel",),
        vmem_limit_bytes=_VMEM_LIMIT_BYTES,
    )
    cost = pl.CostEstimate(
        flops=2 * total,
        transcendentals=total,
        bytes_accessed=total * (in_itemsize + out_itemsize),
    )

    if total % 128 == 0:
        # Common path: exact lane-dense 2-D slab (no pad, no output slice).
        cols = next(c for c in _COL_CHOICES if total % c == 0)
        rows = total // cols
        target_elems = _TARGET_BLOCK_BYTES // max(in_itemsize, out_itemsize)
        block_rows = _pick_block_rows(rows, cols, target_elems)
        grid = (pl.cdiv(rows, block_rows),)
        out2d = pl.pallas_call(
            _tanh_der_kernel,
            out_shape=jax.ShapeDtypeStruct((rows, cols), out_dtype),
            grid=grid,
            in_specs=[pl.BlockSpec((block_rows, cols), lambda i: (i, 0))],
            out_specs=pl.BlockSpec((block_rows, cols), lambda i: (i, 0)),
            compiler_params=compiler_params,
            cost_estimate=cost,
        )(flat.reshape(rows, cols))
        return out2d.reshape(orig_shape)

    # Ragged path: 1-D blocks over the flat array. The last block's OOB reads are
    # harmless for an elementwise op and its OOB writes are dropped, so no
    # pad/concatenate or trailing slice copies are needed.
    block = _ragged_block(total)
    grid = (pl.cdiv(total, block),)
    out1d = pl.pallas_call(
        _tanh_der_kernel,
        out_shape=jax.ShapeDtypeStruct((total,), out_dtype),
        grid=grid,
        in_specs=[pl.BlockSpec((block,), lambda i: (i,))],
        out_specs=pl.BlockSpec((block,), lambda i: (i,)),
        compiler_params=compiler_params,
        cost_estimate=cost,
    )(flat)
    return out1d.reshape(orig_shape)


if __name__ == "__main__":
    key = jax.random.PRNGKey(0)
    keys = jax.random.split(key, 4)

    # Primary test: activation-like tensor (batch=2, channels=4, 16x16), f32.
    x = jax.random.normal(keys[0], (2, 4, 16, 16), dtype=jnp.float32)
    y = jax.block_until_ready(tanh_der(x))
    ref = 1.0 - jnp.tanh(x) ** 2
    assert y.shape == x.shape and y.dtype == x.dtype
    assert jnp.allclose(y, ref, atol=1e-5, rtol=1e-5)

    # Ragged size (231 elements, not a multiple of 128): exercises the 1-D path.
    x2 = jax.random.normal(keys[1], (3, 7, 11), dtype=jnp.float32)
    y2 = jax.block_until_ready(tanh_der(x2))
    ref2 = 1.0 - jnp.tanh(x2) ** 2
    assert y2.shape == x2.shape
    assert jnp.allclose(y2, ref2, atol=1e-5, rtol=1e-5)

    # Multi-block 2-D path (rows=24 -> 2 grid steps, ragged last row-block).
    x3 = jax.random.normal(keys[2], (16, 48, 128), dtype=jnp.float32)
    y3 = jax.block_until_ready(tanh_der(x3))
    ref3 = 1.0 - jnp.tanh(x3) ** 2
    assert y3.shape == x3.shape
    assert jnp.allclose(y3, ref3, atol=1e-5, rtol=1e-5)

    # bf16 path (math stays bf16 in-kernel).
    x4 = jax.random.normal(keys[3], (4, 128, 64), dtype=jnp.bfloat16)
    y4 = jax.block_until_ready(tanh_der(x4))
    ref4 = 1.0 - jnp.tanh(x4.astype(jnp.float32)) ** 2
    assert y4.shape == x4.shape and y4.dtype == jnp.bfloat16
    assert jnp.allclose(y4.astype(jnp.float32), ref4, atol=5e-2)

    print("KERNEL_OK")
</pallas_src>

<mosaic_0001>
module attributes {stable_mosaic.version = 11 : i64} {
  func.func @_tanh_der_kernel(%arg0: i32, %arg1: memref<1x2048xf32, #tpu.memory_space<vmem>>, %arg2: memref<1x2048xf32, #tpu.memory_space<vmem>>) attributes {dimension_semantics = [#tpu.dimension_semantics<parallel>], iteration_bounds = array<i64: 1>, scalar_prefetch = 0 : i64, scratch_operands = 0 : i64, tpu.core_type = #tpu.core_type<tc>, window_params = [{transform_indices = @transform_0, window_bounds = array<i64: 1, 2048>}, {transform_indices = @transform_1, window_bounds = array<i64: 1, 2048>}]} {
    %c0 = arith.constant 0 : index
    %c0_0 = arith.constant 0 : index
    %0 = vector.load %arg1[%c0, %c0_0] : memref<1x2048xf32, #tpu.memory_space<vmem>>, vector<1x2048xf32>
    %1 = math.tanh %0 : vector<1x2048xf32>
    %2 = arith.mulf %1, %1 : vector<1x2048xf32>
    %cst = arith.constant 1.000000e+00 : f32
    %3 = vector.broadcast %cst : f32 to vector<1x2048xf32>
    %4 = arith.subf %3, %2 : vector<1x2048xf32>
    %c0_1 = arith.constant 0 : index
    %c0_2 = arith.constant 0 : index
    %5 = vector.load %arg2[%c0_1, %c0_2] : memref<1x2048xf32, #tpu.memory_space<vmem>>, vector<1x2048xf32>
    tpu.vector_store %arg2[%c0_1, %c0_2], %4 {strides = array<i32>} : memref<1x2048xf32, #tpu.memory_space<vmem>>, vector<1x2048xf32>,
    return
  }
  func.func @transform_0(%arg0: i32) -> (i32, i32) {
    %c0_i32 = arith.constant 0 : i32
    %c0_i32_0 = arith.constant 0 : i32
    return %arg0, %c0_i32 : i32, i32
  }
  func.func @transform_1(%arg0: i32) -> (i32, i32) {
    %c0_i32 = arith.constant 0 : i32
    %c0_i32_0 = arith.constant 0 : i32
    return %arg0, %c0_i32 : i32, i32
  }
}

</mosaic_0001>

<bundles_post_ra>
// kernel: tpu_custom_call.1
= control target key start
LH: loop header
LB: loop body
LE: loop exit
PB: predicated region body
PF: predicated region fallthrough
CT: control target
= control target key end

     0   :  { %6 = vsyncpa [#allocation3], 0  ;;  %s114_s0 = inlined_call_operand.hbm [shape: f32[1,2048], index: 0, kind: input, shape index: {}]   ;;  %s115_s1 = inlined_call_operand.hbm [shape: f32[1,2048], index: 1, kind: output, shape index: {}]  }
   0x1   :  { %7 = vsyncpa [#allocation4], 0  ;;  %s96_s6 = smov [#allocation2]  }
   0x2   :  { %s14_s7 = sshll.u32 %s96_s6, 4  ;;  %s15_s7 = int_to_ptr.vmem [resolvable:$true] %s14_s7 }
   0x3   :  { %s60_s8 = scalar_lea.vmem %s15_s7, 256  ;;  %p65_p1 = scmp.lt.s32.totalorder %s15_s7, %s15_s7 }
   0x4   :  { %p61_p0 = scmp.ne.s32.totalorder %s15_s7, %s60_s8  ;;  %p66_p2 = scmp.lt.s32.totalorder %s60_s8, %s60_s8 }
   0x6   :  { %p67_p3 = por %p66_p2, %p65_p1 }
   0x8   :  { %p68_p4 = pnand %p67_p3, %p61_p0 }
   0xa   :  { %71 = shalt.err (!%p68_p4)
}
   0xb   :  { %17 = dma.hbm_to_vmem [thread:$0]  %s114_s0, 256, %s15_s7, [#allocation3]  }
   0xc   :  { %92 = dma.done.wait [#allocation3], 256  }
   0xd   :  { %93 = vsyncadd [#allocation3], 4294967040  ;;  %v21_v0 = vld [vmem:[#allocation2] sm:$0xff]  ;;  %v22_v1 = vld [vmem:[#allocation2 + $0x8] sm:$0xff]  ;;  %s97_s11 = smov [#allocation5]  }
   0xe   :  { %48 = vtanh.f32 %v21_v0  ;;  %s37_s12 = sshll.u32 %s97_s11, 4  ;;  %s38_s12 = int_to_ptr.vmem [resolvable:$true] %s37_s12 }
   0xf   :  { %50 = vtanh.f32 %v22_v1  ;;  %s72_s13 = scalar_lea.vmem %s38_s12, 256  ;;  %p77_p6 = scmp.lt.s32.totalorder %s38_s12, %s38_s12 }
  0x10   :  { %p73_p5 = scmp.ne.s32.totalorder %s38_s12, %s72_s13  ;;  %p78_p7 = scmp.lt.s32.totalorder %s72_s13, %s72_s13 }
  0x12   :  { %p79_p8 = por %p78_p7, %p77_p6 }
  0x14   :  { %p80_p9 = pnand %p79_p8, %p73_p5 }
  0x1b   :  { %v49_v2 = vpop.eup %48 }
  0x1c   :  { %v51_v3 = vpop.eup %50  ;;  %v25_v4 = vmul.f32 %v49_v2, %v49_v2 }
  0x1d   :  { %v26_v5 = vmul.f32 %v51_v3, %v51_v3 }
  0x1e   :  { %v27_v6 = vsub.f32 1.0, %v25_v4 }
  0x1f   :  { %v28_v7 = vsub.f32 1.0, %v26_v5 }
  0x20   :  { %29 = vst [vmem:[#allocation5] sm:$0xff] %v27_v6 }
  0x21   :  { %30 = vst [vmem:[#allocation5 + $0x8] sm:$0xff] %v28_v7 }
  0x22   :  { %83 = shalt.err (!%p80_p9)
}
  0x23   :  { %40 = dma.vmem_to_hbm [thread:$0]  %s38_s12, 256, %s115_s1, [#allocation4]  }
  0x24   :  { %94 = dma.done.wait [#allocation4], 256  }
  0x25   :  { %95 = vsyncadd [#allocation4], 4294967040 }
  0x26   :  { %44 = vsyncpa [#allocation3], 1 }
  0x27   :  { %45 = vsyncpa [#allocation4], 1 }

</bundles_post_ra>
